<compile_context>
chip_gen: v7x
topology: tpu7x:2x2x1
jax: 0.10.0
libtpu: 0.0.40
codegen_flags: <defaults>
</compile_context>

<pallas_src>
import functools

import jax
import jax.numpy as jnp
from jax.experimental import pallas as pl
from jax.experimental.pallas import tpu as pltpu

TEMPERATURE = 0.07
ALPHA = 1.0
INV_TEMP = 1.0 / TEMPERATURE


def _round_up(x, m):
    return ((x + m - 1) // m) * m


def _num_tensorcores():
    """Best-effort TensorCore count (2 on v7x); falls back to 1."""
    try:
        info = pltpu.get_tpu_info()
        for name in ("num_cores", "core_count", "tensorcore_count", "num_tensor_cores"):
            v = getattr(info, name, None)
            if isinstance(v, int) and v > 0:
                return v
    except Exception:
        pass
    try:
        d = jax.devices()[0]
        for name in ("num_cores", "core_count"):
            v = getattr(d, name, None)
            if isinstance(v, int) and v > 0:
                return v
    except Exception:
        pass
    return 1


def _count_loss_kernel(img_ref, txt_ref, imgd_ref, txtd_ref, ei_ref, ek_ref, ekcf_ref,
                       clip_ref, count_ref, total_ref, *,
                       total_b, tile_b, tiles_per_core):
    c = pl.program_id(0)          # TensorCore split ("parallel")
    j = pl.program_id(1)          # batch-tile index within this core ("arbitrary")

    @pl.when(j == 0)
    def _init():
        clip_ref[...] = jnp.zeros_like(clip_ref)
        count_ref[...] = jnp.zeros_like(count_ref)
        total_ref[...] = jnp.zeros_like(total_ref)

    inv_b = 1.0 / total_b                                       # compile-time constant
    row0 = (c * tiles_per_core + j) * tile_b                    # global row offset of tile

    # Row-validity mask: padded tail rows contribute exactly 0 to every sum.
    row_ids = row0 + jax.lax.broadcasted_iota(jnp.int32, (tile_b, 1), 0)
    rowm = row_ids < total_b                                    # (TB, 1)

    # Local diagonal mask over the (TB, TB) diagonal block (step-invariant).
    eye = (jax.lax.broadcasted_iota(jnp.int32, (tile_b, tile_b), 0)
           == jax.lax.broadcasted_iota(jnp.int32, (tile_b, tile_b), 1))

    # ---------- CLIP contrastive CE (targets = global row index / diagonal) ----------
    def ce_partial(full_ref, diag_ref):
        logits = full_ref[...].astype(jnp.float32)              # (TB, NCLS)
        m = jnp.max(logits, axis=1, keepdims=True)
        # TODO(synk): on v7x, if EUP/XLU become binding, do this row-sum as jnp.dot with a
        #             ones vector to offload the reduce onto the otherwise-idle MXU.
        lse = jnp.log(jnp.sum(jnp.exp(logits - m), axis=1, keepdims=True)) + m
        diag_blk = diag_ref[...].astype(jnp.float32)            # (TB, TB) block on the diag
        tgt = jnp.sum(jnp.where(eye, diag_blk, 0.0), axis=1, keepdims=True)
        return jnp.sum(jnp.where(rowm, lse - tgt, 0.0), axis=0, keepdims=True)  # (1, 1)

    clip_partial = (ce_partial(img_ref, imgd_ref)
                    + ce_partial(txt_ref, txtd_ref)) * (0.5 * inv_b)

    # ---------- counterfactual count loss: logsumexp(cf) - correct ----------
    ei = ei_ref[...].astype(jnp.float32)                        # (TB, D)
    ek = ek_ref[...].astype(jnp.float32)                        # (TB, D)
    # fold 1/temperature into ei's per-row scale; normalized embeddings never materialized
    ei_scale = jax.lax.rsqrt(jnp.sum(ei * ei, axis=1, keepdims=True)) * INV_TEMP
    ek_scale = jax.lax.rsqrt(jnp.sum(ek * ek, axis=1, keepdims=True))
    correct = jnp.sum(ei * ek, axis=1, keepdims=True) * ei_scale * ek_scale

    ekcf = ekcf_ref[...]                                        # (TB, K, D), original dtype
    n_cf = ekcf.shape[1]                                        # static, small -> unrolled
    cf_scores = []
    for k in range(n_cf):
        x = ekcf[:, k, :].astype(jnp.float32)                   # (TB, D)
        x_scale = jax.lax.rsqrt(jnp.sum(x * x, axis=1, keepdims=True))
        cf_scores.append(jnp.sum(ei * x, axis=1, keepdims=True) * ei_scale * x_scale)

    m_cf = cf_scores[0]
    for s in cf_scores[1:]:
        m_cf = jnp.maximum(m_cf, s)
    den = jnp.exp(cf_scores[0] - m_cf)
    for s in cf_scores[1:]:
        den = den + jnp.exp(s - m_cf)
    lse_cf = jnp.log(den) + m_cf                                # (TB, 1) logsumexp over K

    count_partial = jnp.sum(jnp.where(rowm, lse_cf - correct, 0.0),
                            axis=0, keepdims=True) * inv_b      # (1, 1)

    # ---------- accumulate; combine once at this core's last step ----------
    clip_ref[...] += clip_partial[None]
    count_ref[...] += count_partial[None]

    @pl.when(j == pl.num_programs(1) - 1)
    def _finalize():
        total_ref[...] = clip_ref[...] + ALPHA * count_ref[...]


def count_loss(img_logits, text_logits, ei, ek, ek_cf, *, max_tile_b=512):
    B, ncls = img_logits.shape
    D = ei.shape[1]
    K = ek_cf.shape[1]
    assert text_logits.shape == (B, ncls)
    assert ei.shape == (B, D) and ek.shape == (B, D) and ek_cf.shape == (B, K, D)
    assert ncls >= B, "CLIP-style contrastive targets are the diagonal: need ncls >= B"

    it_log = jnp.dtype(img_logits.dtype).itemsize
    it_emb = jnp.dtype(ei.dtype).itemsize

    # ----- VMEM budget from real chip capacity (v7x has only 64 MiB) -----
    try:
        vmem_cap = int(pltpu.get_tpu_info().vmem_capacity_bytes)
    except Exception:
        vmem_cap = 64 * 1024 * 1024
    budget = max(vmem_cap - 16 * 1024 * 1024, 16 * 1024 * 1024)

    def per_step_bytes(tb):
        ncp = max(ncls, _round_up(B, tb))
        ins = (2 * tb * ncp * it_log                      # img + text full-width tiles
               + 2 * tb * tb * it_log                     # two diagonal blocks
               + 2 * tb * D * it_emb                      # ei + ek tiles
               + tb * _round_up(K, 8) * D * it_emb)       # ek_cf tile (K sublane-padded)
        return 2 * ins + 6 * tb * ncp + (1 << 20)         # double-buffer + f32 temp slack

    # largest 128-aligned batch tile that fits the VMEM budget
    tile_b = min(max(128, (max_tile_b // 128) * 128), _round_up(B, 128))
    while tile_b > 128 and per_step_bytes(tile_b) > budget:
        tile_b -= 128

    n_tiles = -(-B // tile_b)
    cores = _num_tensorcores()
    num_split = 2 if (n_tiles >= 2 and (cores >= 2 or n_tiles % 2 == 0)) else 1
    tiles_per_core = -(-n_tiles // num_split)
    b_pad = num_split * tiles_per_core * tile_b
    ncls_pad = max(ncls, _round_up(B, tile_b))
    max_col_block = ncls_pad // tile_b - 1

    # ----- padding (no-op on aligned shapes); padded rows are masked in-kernel -----
    neg_fill = -1e30   # padded logits columns contribute exp() == 0 to every row's lse

    def pad2(a, rows, cols, fill):
        if rows == a.shape[0] and cols == a.shape[1]:
            return a
        return jnp.pad(a, ((0, rows - a.shape[0]), (0, cols - a.shape[1])),
                       constant_values=fill)

    def pad_rows(a, rows, fill):
        if rows == a.shape[0]:
            return a
        cfg = [(0, rows - a.shape[0])] + [(0, 0)] * (a.ndim - 1)
        return jnp.pad(a, cfg, constant_values=fill)

    img_p = pad2(img_logits, b_pad, ncls_pad, neg_fill)
    txt_p = pad2(text_logits, b_pad, ncls_pad, neg_fill)
    ei_p = pad_rows(ei, b_pad, 1.0)
    ek_p = pad_rows(ek, b_pad, 1.0)
    ekcf_p = pad_rows(ek_cf, b_pad, 1.0)

    est = per_step_bytes(tile_b)
    vmem_limit = int(min(max(est, 32 * 1024 * 1024), vmem_cap - 16 * 1024 * 1024))
    vmem_limit = max(vmem_limit, 16 * 1024 * 1024)

    kernel = functools.partial(_count_loss_kernel, total_b=B, tile_b=tile_b,
                               tiles_per_core=tiles_per_core)

    tpc = tiles_per_core
    row_map2 = lambda c, j: (c * tpc + j, 0)
    row_map3 = lambda c, j: (c * tpc + j, 0, 0)
    # diagonal block: column block index == row tile index (clamped for fully padded tiles)
    diag_map = lambda c, j: (c * tpc + j, jnp.minimum(c * tpc + j, max_col_block))

    acc_spec = pl.BlockSpec((1, 1, 1), lambda c, j: (c, 0, 0))
    acc_shape = jax.ShapeDtypeStruct((num_split, 1, 1), jnp.float32)

    clip, count, total = pl.pallas_call(
        kernel,
        grid=(num_split, tiles_per_core),
        in_specs=[
            pl.BlockSpec((tile_b, ncls_pad), row_map2),      # img_logits tile
            pl.BlockSpec((tile_b, ncls_pad), row_map2),      # text_logits tile
            pl.BlockSpec((tile_b, tile_b), diag_map),        # img diagonal block
            pl.BlockSpec((tile_b, tile_b), diag_map),        # text diagonal block
            pl.BlockSpec((tile_b, D), row_map2),             # ei tile
            pl.BlockSpec((tile_b, D), row_map2),             # ek tile
            pl.BlockSpec((tile_b, K, D), row_map3),          # ek_cf tile (natural layout)
        ],
        out_specs=(acc_spec, acc_spec, acc_spec),
        out_shape=(acc_shape, acc_shape, acc_shape),
        compiler_params=pltpu.CompilerParams(
            dimension_semantics=("parallel", "arbitrary"),   # cores x batch-tile reduction
            vmem_limit_bytes=vmem_limit,
        ),
    )(img_p, txt_p, img_p, txt_p, ei_p, ek_p, ekcf_p)

    return {
        "clip_loss": jnp.sum(clip),
        "count_loss": jnp.sum(count),
        "total_loss": jnp.sum(total),
    }


def _reference(img_logits, text_logits, ei, ek, ek_cf):
    # pure-JAX reference mirroring the PyTorch module
    B = img_logits.shape[0]

    def ce(logits):
        logp = jax.nn.log_softmax(logits.astype(jnp.float32), axis=1)
        return -jnp.mean(logp[jnp.arange(B), jnp.arange(B)])

    clip = (ce(img_logits) + ce(text_logits)) / 2.0
    ei = ei.astype(jnp.float32)
    ek = ek.astype(jnp.float32)
    ek_cf = ek_cf.astype(jnp.float32)
    ei_n = ei / jnp.linalg.norm(ei, axis=1, keepdims=True)
    ek_n = ek / jnp.linalg.norm(ek, axis=1, keepdims=True)
    ekcf_n = ek_cf / jnp.linalg.norm(ek_cf, axis=2, keepdims=True)
    cs = jnp.sum(ei_n * ek_n, axis=1) / TEMPERATURE
    num = jnp.exp(cs)
    cf = jnp.sum(ei_n[:, None, :] * ekcf_n, axis=2) / TEMPERATURE
    den = jnp.sum(jnp.exp(cf), axis=1)
    cnt = jnp.mean(-jnp.log(num / den))
    return {"clip_loss": clip, "count_loss": cnt, "total_loss": clip + ALPHA * cnt}


if __name__ == "__main__":
    root = jax.random.PRNGKey(0)
    keys = jax.random.split(root, 4)

    def make_inputs(key, B, D, K, dtype=jnp.float32):
        k1, k2, k3, k4, k5 = jax.random.split(key, 5)
        return (jax.random.normal(k1, (B, B), dtype=dtype),
                jax.random.normal(k2, (B, B), dtype=dtype),
                jax.random.normal(k3, (B, D), dtype=dtype),
                jax.random.normal(k4, (B, D), dtype=dtype),
                jax.random.normal(k5, (B, K, D), dtype=dtype))

    def check(out, ref, rtol, atol, tag):
        for name in ("clip_loss", "count_loss", "total_loss"):
            assert jnp.allclose(out[name], ref[name], rtol=rtol, atol=atol), (
                tag, name, out[name], ref[name])

    # 1) tiny batch -> single padded 128-row tile; exercises row/column masking hard.
    args = make_inputs(keys[0], 8, 32, 4)
    out = count_loss(*args)
    jax.block_until_ready(out)
    check(out, _reference(*args), 1e-4, 1e-4, "tiny")

    # 2) multi-tile grid with the dual-core split (B=512, tile=128).
    args = make_inputs(keys[1], 512, 64, 4)
    out = count_loss(*args, max_tile_b=128)
    jax.block_until_ready(out)
    check(out, _reference(*args), 1e-4, 1e-4, "multi")

    # 3) batch not a multiple of the tile -> masked tail tile inside the grid.
    args = make_inputs(keys[2], 300, 64, 4)
    out = count_loss(*args, max_tile_b=128)
    jax.block_until_ready(out)
    check(out, _reference(*args), 1e-4, 1e-4, "ragged")

    # 4) bf16 inputs (recommended caller contract: halves the O(B^2) HBM stream).
    args = make_inputs(keys[3], 256, 64, 4, dtype=jnp.bfloat16)
    out = count_loss(*args)
    jax.block_until_ready(out)
    check(out, _reference(*args), 1e-3, 1e-3, "bf16")

    print("KERNEL_OK")
</pallas_src>

<mosaic_0001>
module attributes {stable_mosaic.version = 11 : i64} {
  func.func @_count_loss_kernel(%arg0: i32, %arg1: i32, %arg2: memref<128x128xf32, #tpu.memory_space<vmem>>, %arg3: memref<128x128xf32, #tpu.memory_space<vmem>>, %arg4: memref<128x128xf32, #tpu.memory_space<vmem>>, %arg5: memref<128x128xf32, #tpu.memory_space<vmem>>, %arg6: memref<128x32xf32, #tpu.memory_space<vmem>>, %arg7: memref<128x32xf32, #tpu.memory_space<vmem>>, %arg8: memref<128x4x32xf32, #tpu.memory_space<vmem>>, %arg9: memref<1x1x1xf32, #tpu.memory_space<vmem>>, %arg10: memref<1x1x1xf32, #tpu.memory_space<vmem>>, %arg11: memref<1x1x1xf32, #tpu.memory_space<vmem>>) attributes {dimension_semantics = [#tpu.dimension_semantics<parallel>, #tpu.dimension_semantics<arbitrary>], iteration_bounds = array<i64: 1, 1>, scalar_prefetch = 0 : i64, scratch_operands = 0 : i64, tpu.core_type = #tpu.core_type<tc>, window_params = [{transform_indices = @transform_0, window_bounds = array<i64: 128, 128>}, {transform_indices = @transform_1, window_bounds = array<i64: 128, 128>}, {transform_indices = @transform_2, window_bounds = array<i64: 128, 128>}, {transform_indices = @transform_3, window_bounds = array<i64: 128, 128>}, {transform_indices = @transform_4, window_bounds = array<i64: 128, 32>}, {transform_indices = @transform_5, window_bounds = array<i64: 128, 32>}, {transform_indices = @transform_6, window_bounds = array<i64: 128, 4, 32>}, {transform_indices = @transform_7, window_bounds = array<i64: 1, 1, 1>}, {transform_indices = @transform_8, window_bounds = array<i64: 1, 1, 1>}, {transform_indices = @transform_9, window_bounds = array<i64: 1, 1, 1>}]} {
    %c0_i32 = arith.constant 0 : i32
    %0 = arith.cmpi eq, %arg1, %c0_i32 : i32
    %1 = arith.extui %0 : i1 to i32
    %c0_i32_0 = arith.constant 0 : i32
    %2 = arith.cmpi ne, %1, %c0_i32_0 : i32
    scf.if %2 {
      %cst_56 = arith.constant 0.000000e+00 : f32
      %153 = vector.broadcast %cst_56 : f32 to vector<1x1x1xf32>
      %c0_57 = arith.constant 0 : index
      %c0_58 = arith.constant 0 : index
      %c0_59 = arith.constant 0 : index
      %154 = vector.load %arg9[%c0_57, %c0_58, %c0_59] : memref<1x1x1xf32, #tpu.memory_space<vmem>>, vector<1x1x1xf32>
      tpu.vector_store %arg9[%c0_57, %c0_58, %c0_59], %153 {strides = array<i32>} : memref<1x1x1xf32, #tpu.memory_space<vmem>>, vector<1x1x1xf32>,
      %cst_60 = arith.constant 0.000000e+00 : f32
      %155 = vector.broadcast %cst_60 : f32 to vector<1x1x1xf32>
      %c0_61 = arith.constant 0 : index
      %c0_62 = arith.constant 0 : index
      %c0_63 = arith.constant 0 : index
      %156 = vector.load %arg10[%c0_61, %c0_62, %c0_63] : memref<1x1x1xf32, #tpu.memory_space<vmem>>, vector<1x1x1xf32>
      tpu.vector_store %arg10[%c0_61, %c0_62, %c0_63], %155 {strides = array<i32>} : memref<1x1x1xf32, #tpu.memory_space<vmem>>, vector<1x1x1xf32>,
      %cst_64 = arith.constant 0.000000e+00 : f32
      %157 = vector.broadcast %cst_64 : f32 to vector<1x1x1xf32>
      %c0_65 = arith.constant 0 : index
      %c0_66 = arith.constant 0 : index
      %c0_67 = arith.constant 0 : index
      %158 = vector.load %arg11[%c0_65, %c0_66, %c0_67] : memref<1x1x1xf32, #tpu.memory_space<vmem>>, vector<1x1x1xf32>
      tpu.vector_store %arg11[%c0_65, %c0_66, %c0_67], %157 {strides = array<i32>} : memref<1x1x1xf32, #tpu.memory_space<vmem>>, vector<1x1x1xf32>,
    } else {
    }
    %c1_i32 = arith.constant 1 : i32
    %3 = arith.muli %arg0, %c1_i32 : i32
    %4 = arith.addi %3, %arg1 : i32
    %c128_i32 = arith.constant 128 : i32
    %5 = arith.muli %4, %c128_i32 : i32
    %6 = tpu.iota {dimensions = array<i32: 0>} : vector<128x1xi32>
    %7 = vector.broadcast %5 : i32 to vector<128x1xi32>
    %8 = arith.addi %7, %6 : vector<128x1xi32>
    %c8_i32 = arith.constant 8 : i32
    %9 = vector.broadcast %c8_i32 : i32 to vector<128x1xi32>
    %10 = arith.cmpi slt, %8, %9 : vector<128x1xi32>
    %11 = tpu.iota {dimensions = array<i32: 0>} : vector<128x128xi32>
    %12 = tpu.iota {dimensions = array<i32: 1>} : vector<128x128xi32>
    %13 = arith.cmpi eq, %11, %12 : vector<128x128xi32>
    %c0 = arith.constant 0 : index
    %c0_1 = arith.constant 0 : index
    %14 = vector.load %arg2[%c0, %c0_1] : memref<128x128xf32, #tpu.memory_space<vmem>>, vector<128x128xf32>
    %cst = arith.constant dense<0xFF800000> : vector<128xf32>
    %15 = vector.multi_reduction <maximumf>, %14, %cst [1] : vector<128x128xf32> to vector<128xf32>
    %16 = vector.shape_cast %15 : vector<128xf32> to vector<128x1xf32>
    %17 = vector.broadcast %16 : vector<128x1xf32> to vector<128x128xf32>
    %18 = arith.subf %14, %17 : vector<128x128xf32>
    %19 = math.exp %18 : vector<128x128xf32>
    %cst_2 = arith.constant dense<0.000000e+00> : vector<128xf32>
    %20 = vector.multi_reduction <add>, %19, %cst_2 [1] : vector<128x128xf32> to vector<128xf32>
    %21 = vector.shape_cast %20 : vector<128xf32> to vector<128x1xf32>
    %22 = math.log %21 : vector<128x1xf32>
    %23 = arith.addf %22, %16 : vector<128x1xf32>
    %c0_3 = arith.constant 0 : index
    %c0_4 = arith.constant 0 : index
    %24 = vector.load %arg4[%c0_3, %c0_4] : memref<128x128xf32, #tpu.memory_space<vmem>>, vector<128x128xf32>
    %cst_5 = arith.constant 0.000000e+00 : f32
    %25 = vector.broadcast %cst_5 : f32 to vector<128x128xf32>
    %26 = arith.select %13, %24, %25 : vector<128x128xi1>, vector<128x128xf32>
    %cst_6 = arith.constant dense<0.000000e+00> : vector<128xf32>
    %27 = vector.multi_reduction <add>, %26, %cst_6 [1] : vector<128x128xf32> to vector<128xf32>
    %28 = vector.shape_cast %27 : vector<128xf32> to vector<128x1xf32>
    %29 = arith.subf %23, %28 : vector<128x1xf32>
    %cst_7 = arith.constant 0.000000e+00 : f32
    %30 = vector.broadcast %cst_7 : f32 to vector<128x1xf32>
    %31 = arith.select %10, %29, %30 : vector<128x1xi1>, vector<128x1xf32>
    %cst_8 = arith.constant dense<0.000000e+00> : vector<1xf32>
    %32 = vector.multi_reduction <add>, %31, %cst_8 [0] : vector<128x1xf32> to vector<1xf32>
    %33 = vector.shape_cast %32 : vector<1xf32> to vector<1x1xf32>
    %c0_9 = arith.constant 0 : index
    %c0_10 = arith.constant 0 : index
    %34 = vector.load %arg3[%c0_9, %c0_10] : memref<128x128xf32, #tpu.memory_space<vmem>>, vector<128x128xf32>
    %cst_11 = arith.constant dense<0xFF800000> : vector<128xf32>
    %35 = vector.multi_reduction <maximumf>, %34, %cst_11 [1] : vector<128x128xf32> to vector<128xf32>
    %36 = vector.shape_cast %35 : vector<128xf32> to vector<128x1xf32>
    %37 = vector.broadcast %36 : vector<128x1xf32> to vector<128x128xf32>
    %38 = arith.subf %34, %37 : vector<128x128xf32>
    %39 = math.exp %38 : vector<128x128xf32>
    %cst_12 = arith.constant dense<0.000000e+00> : vector<128xf32>
    %40 = vector.multi_reduction <add>, %39, %cst_12 [1] : vector<128x128xf32> to vector<128xf32>
    %41 = vector.shape_cast %40 : vector<128xf32> to vector<128x1xf32>
    %42 = math.log %41 : vector<128x1xf32>
    %43 = arith.addf %42, %36 : vector<128x1xf32>
    %c0_13 = arith.constant 0 : index
    %c0_14 = arith.constant 0 : index
    %44 = vector.load %arg5[%c0_13, %c0_14] : memref<128x128xf32, #tpu.memory_space<vmem>>, vector<128x128xf32>
    %cst_15 = arith.constant 0.000000e+00 : f32
    %45 = vector.broadcast %cst_15 : f32 to vector<128x128xf32>
    %46 = arith.select %13, %44, %45 : vector<128x128xi1>, vector<128x128xf32>
    %cst_16 = arith.constant dense<0.000000e+00> : vector<128xf32>
    %47 = vector.multi_reduction <add>, %46, %cst_16 [1] : vector<128x128xf32> to vector<128xf32>
    %48 = vector.shape_cast %47 : vector<128xf32> to vector<128x1xf32>
    %49 = arith.subf %43, %48 : vector<128x1xf32>
    %cst_17 = arith.constant 0.000000e+00 : f32
    %50 = vector.broadcast %cst_17 : f32 to vector<128x1xf32>
    %51 = arith.select %10, %49, %50 : vector<128x1xi1>, vector<128x1xf32>
    %cst_18 = arith.constant dense<0.000000e+00> : vector<1xf32>
    %52 = vector.multi_reduction <add>, %51, %cst_18 [0] : vector<128x1xf32> to vector<1xf32>
    %53 = vector.shape_cast %52 : vector<1xf32> to vector<1x1xf32>
    %54 = arith.addf %33, %53 : vector<1x1xf32>
    %cst_19 = arith.constant 6.250000e-02 : f32
    %55 = vector.broadcast %cst_19 : f32 to vector<1x1xf32>
    %56 = arith.mulf %54, %55 : vector<1x1xf32>
    %c0_20 = arith.constant 0 : index
    %c0_21 = arith.constant 0 : index
    %57 = vector.load %arg6[%c0_20, %c0_21] : memref<128x32xf32, #tpu.memory_space<vmem>>, vector<128x32xf32>
    %c0_22 = arith.constant 0 : index
    %c0_23 = arith.constant 0 : index
    %58 = vector.load %arg7[%c0_22, %c0_23] : memref<128x32xf32, #tpu.memory_space<vmem>>, vector<128x32xf32>
    %59 = arith.mulf %57, %57 : vector<128x32xf32>
    %cst_24 = arith.constant dense<0.000000e+00> : vector<128xf32>
    %60 = vector.multi_reduction <add>, %59, %cst_24 [1] : vector<128x32xf32> to vector<128xf32>
    %61 = vector.shape_cast %60 : vector<128xf32> to vector<128x1xf32>
    %62 = math.rsqrt %61 : vector<128x1xf32>
    %cst_25 = arith.constant 14.2857141 : f32
    %63 = vector.broadcast %cst_25 : f32 to vector<128x1xf32>
    %64 = arith.mulf %62, %63 : vector<128x1xf32>
    %65 = arith.mulf %58, %58 : vector<128x32xf32>
    %cst_26 = arith.constant dense<0.000000e+00> : vector<128xf32>
    %66 = vector.multi_reduction <add>, %65, %cst_26 [1] : vector<128x32xf32> to vector<128xf32>
    %67 = vector.shape_cast %66 : vector<128xf32> to vector<128x1xf32>
    %68 = math.rsqrt %67 : vector<128x1xf32>
    %69 = arith.mulf %57, %58 : vector<128x32xf32>
    %cst_27 = arith.constant dense<0.000000e+00> : vector<128xf32>
    %70 = vector.multi_reduction <add>, %69, %cst_27 [1] : vector<128x32xf32> to vector<128xf32>
    %71 = vector.shape_cast %70 : vector<128xf32> to vector<128x1xf32>
    %72 = arith.mulf %71, %64 : vector<128x1xf32>
    %73 = arith.mulf %72, %68 : vector<128x1xf32>
    %c0_28 = arith.constant 0 : index
    %c0_29 = arith.constant 0 : index
    %c0_30 = arith.constant 0 : index
    %74 = vector.load %arg8[%c0_28, %c0_29, %c0_30] : memref<128x4x32xf32, #tpu.memory_space<vmem>>, vector<128x4x32xf32>
    %75 = vector.extract_strided_slice %74 {offsets = [0, 0, 0], sizes = [128, 1, 32], strides = [1, 1, 1]} : vector<128x4x32xf32> to vector<128x1x32xf32>
    %76 = vector.shape_cast %75 : vector<128x1x32xf32> to vector<128x32xf32>
    %77 = arith.mulf %76, %76 : vector<128x32xf32>
    %cst_31 = arith.constant dense<0.000000e+00> : vector<128xf32>
    %78 = vector.multi_reduction <add>, %77, %cst_31 [1] : vector<128x32xf32> to vector<128xf32>
    %79 = vector.shape_cast %78 : vector<128xf32> to vector<128x1xf32>
    %80 = math.rsqrt %79 : vector<128x1xf32>
    %81 = arith.mulf %57, %76 : vector<128x32xf32>
    %cst_32 = arith.constant dense<0.000000e+00> : vector<128xf32>
    %82 = vector.multi_reduction <add>, %81, %cst_32 [1] : vector<128x32xf32> to vector<128xf32>
    %83 = vector.shape_cast %82 : vector<128xf32> to vector<128x1xf32>
    %84 = arith.mulf %83, %64 : vector<128x1xf32>
    %85 = arith.mulf %84, %80 : vector<128x1xf32>
    %86 = vector.extract_strided_slice %74 {offsets = [0, 1, 0], sizes = [128, 1, 32], strides = [1, 1, 1]} : vector<128x4x32xf32> to vector<128x1x32xf32>
    %87 = vector.shape_cast %86 : vector<128x1x32xf32> to vector<128x32xf32>
    %88 = arith.mulf %87, %87 : vector<128x32xf32>
    %cst_33 = arith.constant dense<0.000000e+00> : vector<128xf32>
    %89 = vector.multi_reduction <add>, %88, %cst_33 [1] : vector<128x32xf32> to vector<128xf32>
    %90 = vector.shape_cast %89 : vector<128xf32> to vector<128x1xf32>
    %91 = math.rsqrt %90 : vector<128x1xf32>
    %92 = arith.mulf %57, %87 : vector<128x32xf32>
    %cst_34 = arith.constant dense<0.000000e+00> : vector<128xf32>
    %93 = vector.multi_reduction <add>, %92, %cst_34 [1] : vector<128x32xf32> to vector<128xf32>
    %94 = vector.shape_cast %93 : vector<128xf32> to vector<128x1xf32>
    %95 = arith.mulf %94, %64 : vector<128x1xf32>
    %96 = arith.mulf %95, %91 : vector<128x1xf32>
    %97 = vector.extract_strided_slice %74 {offsets = [0, 2, 0], sizes = [128, 1, 32], strides = [1, 1, 1]} : vector<128x4x32xf32> to vector<128x1x32xf32>
    %98 = vector.shape_cast %97 : vector<128x1x32xf32> to vector<128x32xf32>
    %99 = arith.mulf %98, %98 : vector<128x32xf32>
    %cst_35 = arith.constant dense<0.000000e+00> : vector<128xf32>
    %100 = vector.multi_reduction <add>, %99, %cst_35 [1] : vector<128x32xf32> to vector<128xf32>
    %101 = vector.shape_cast %100 : vector<128xf32> to vector<128x1xf32>
    %102 = math.rsqrt %101 : vector<128x1xf32>
    %103 = arith.mulf %57, %98 : vector<128x32xf32>
    %cst_36 = arith.constant dense<0.000000e+00> : vector<128xf32>
    %104 = vector.multi_reduction <add>, %103, %cst_36 [1] : vector<128x32xf32> to vector<128xf32>
    %105 = vector.shape_cast %104 : vector<128xf32> to vector<128x1xf32>
    %106 = arith.mulf %105, %64 : vector<128x1xf32>
    %107 = arith.mulf %106, %102 : vector<128x1xf32>
    %108 = vector.extract_strided_slice %74 {offsets = [0, 3, 0], sizes = [128, 1, 32], strides = [1, 1, 1]} : vector<128x4x32xf32> to vector<128x1x32xf32>
    %109 = vector.shape_cast %108 : vector<128x1x32xf32> to vector<128x32xf32>
    %110 = arith.mulf %109, %109 : vector<128x32xf32>
    %cst_37 = arith.constant dense<0.000000e+00> : vector<128xf32>
    %111 = vector.multi_reduction <add>, %110, %cst_37 [1] : vector<128x32xf32> to vector<128xf32>
    %112 = vector.shape_cast %111 : vector<128xf32> to vector<128x1xf32>
    %113 = math.rsqrt %112 : vector<128x1xf32>
    %114 = arith.mulf %57, %109 : vector<128x32xf32>
    %cst_38 = arith.constant dense<0.000000e+00> : vector<128xf32>
    %115 = vector.multi_reduction <add>, %114, %cst_38 [1] : vector<128x32xf32> to vector<128xf32>
    %116 = vector.shape_cast %115 : vector<128xf32> to vector<128x1xf32>
    %117 = arith.mulf %116, %64 : vector<128x1xf32>
    %118 = arith.mulf %117, %113 : vector<128x1xf32>
    %119 = arith.maximumf %85, %96 : vector<128x1xf32>
    %120 = arith.maximumf %119, %107 : vector<128x1xf32>
    %121 = arith.maximumf %120, %118 : vector<128x1xf32>
    %122 = arith.subf %85, %121 : vector<128x1xf32>
    %123 = math.exp %122 : vector<128x1xf32>
    %124 = arith.subf %96, %121 : vector<128x1xf32>
    %125 = math.exp %124 : vector<128x1xf32>
    %126 = arith.addf %123, %125 : vector<128x1xf32>
    %127 = arith.subf %107, %121 : vector<128x1xf32>
    %128 = math.exp %127 : vector<128x1xf32>
    %129 = arith.addf %126, %128 : vector<128x1xf32>
    %130 = arith.subf %118, %121 : vector<128x1xf32>
    %131 = math.exp %130 : vector<128x1xf32>
    %132 = arith.addf %129, %131 : vector<128x1xf32>
    %133 = math.log %132 : vector<128x1xf32>
    %134 = arith.addf %133, %121 : vector<128x1xf32>
    %135 = arith.subf %134, %73 : vector<128x1xf32>
    %cst_39 = arith.constant 0.000000e+00 : f32
    %136 = vector.broadcast %cst_39 : f32 to vector<128x1xf32>
    %137 = arith.select %10, %135, %136 : vector<128x1xi1>, vector<128x1xf32>
    %cst_40 = arith.constant dense<0.000000e+00> : vector<1xf32>
    %138 = vector.multi_reduction <add>, %137, %cst_40 [0] : vector<128x1xf32> to vector<1xf32>
    %139 = vector.shape_cast %138 : vector<1xf32> to vector<1x1xf32>
    %cst_41 = arith.constant 1.250000e-01 : f32
    %140 = vector.broadcast %cst_41 : f32 to vector<1x1xf32>
    %141 = arith.mulf %139, %140 : vector<1x1xf32>
    %c0_42 = arith.constant 0 : index
    %c0_43 = arith.constant 0 : index
    %c0_44 = arith.constant 0 : index
    %142 = vector.load %arg9[%c0_42, %c0_43, %c0_44] : memref<1x1x1xf32, #tpu.memory_space<vmem>>, vector<1x1x1xf32>
    %143 = vector.shape_cast %56 : vector<1x1xf32> to vector<1x1x1xf32>
    %144 = arith.addf %142, %143 : vector<1x1x1xf32>
    %c0_45 = arith.constant 0 : index
    %c0_46 = arith.constant 0 : index
    %c0_47 = arith.constant 0 : index
    %145 = vector.load %arg9[%c0_45, %c0_46, %c0_47] : memref<1x1x1xf32, #tpu.memory_space<vmem>>, vector<1x1x1xf32>
    tpu.vector_store %arg9[%c0_45, %c0_46, %c0_47], %144 {strides = array<i32>} : memref<1x1x1xf32, #tpu.memory_space<vmem>>, vector<1x1x1xf32>,
    %c0_48 = arith.constant 0 : index
    %c0_49 = arith.constant 0 : index
    %c0_50 = arith.constant 0 : index
    %146 = vector.load %arg10[%c0_48, %c0_49, %c0_50] : memref<1x1x1xf32, #tpu.memory_space<vmem>>, vector<1x1x1xf32>
    %147 = vector.shape_cast %141 : vector<1x1xf32> to vector<1x1x1xf32>
    %148 = arith.addf %146, %147 : vector<1x1x1xf32>
    %c0_51 = arith.constant 0 : index
    %c0_52 = arith.constant 0 : index
    %c0_53 = arith.constant 0 : index
    %149 = vector.load %arg10[%c0_51, %c0_52, %c0_53] : memref<1x1x1xf32, #tpu.memory_space<vmem>>, vector<1x1x1xf32>
    tpu.vector_store %arg10[%c0_51, %c0_52, %c0_53], %148 {strides = array<i32>} : memref<1x1x1xf32, #tpu.memory_space<vmem>>, vector<1x1x1xf32>,
    %c0_i32_54 = arith.constant 0 : i32
    %150 = arith.cmpi eq, %arg1, %c0_i32_54 : i32
    %151 = arith.extui %150 : i1 to i32
    %c0_i32_55 = arith.constant 0 : i32
    %152 = arith.cmpi ne, %151, %c0_i32_55 : i32
    scf.if %152 {
      %c0_56 = arith.constant 0 : index
      %c0_57 = arith.constant 0 : index
      %c0_58 = arith.constant 0 : index
      %153 = vector.load %arg9[%c0_56, %c0_57, %c0_58] : memref<1x1x1xf32, #tpu.memory_space<vmem>>, vector<1x1x1xf32>
      %c0_59 = arith.constant 0 : index
      %c0_60 = arith.constant 0 : index
      %c0_61 = arith.constant 0 : index
      %154 = vector.load %arg10[%c0_59, %c0_60, %c0_61] : memref<1x1x1xf32, #tpu.memory_space<vmem>>, vector<1x1x1xf32>
      %cst_62 = arith.constant 1.000000e+00 : f32
      %155 = vector.broadcast %cst_62 : f32 to vector<1x1x1xf32>
      %156 = arith.mulf %155, %154 : vector<1x1x1xf32>
      %157 = arith.addf %153, %156 : vector<1x1x1xf32>
      %c0_63 = arith.constant 0 : index
      %c0_64 = arith.constant 0 : index
      %c0_65 = arith.constant 0 : index
      %158 = vector.load %arg11[%c0_63, %c0_64, %c0_65] : memref<1x1x1xf32, #tpu.memory_space<vmem>>, vector<1x1x1xf32>
      tpu.vector_store %arg11[%c0_63, %c0_64, %c0_65], %157 {strides = array<i32>} : memref<1x1x1xf32, #tpu.memory_space<vmem>>, vector<1x1x1xf32>,
    } else {
    }
    return
  }
  func.func @transform_0(%arg0: i32, %arg1: i32) -> (i32, i32) {
    %c1_i32 = arith.constant 1 : i32
    %0 = arith.muli %arg0, %c1_i32 : i32
    %1 = arith.addi %0, %arg1 : i32
    %c0_i32 = arith.constant 0 : i32
    %c0_i32_0 = arith.constant 0 : i32
    return %1, %c0_i32 : i32, i32
  }
  func.func @transform_1(%arg0: i32, %arg1: i32) -> (i32, i32) {
    %c1_i32 = arith.constant 1 : i32
    %0 = arith.muli %arg0, %c1_i32 : i32
    %1 = arith.addi %0, %arg1 : i32
    %c0_i32 = arith.constant 0 : i32
    %c0_i32_0 = arith.constant 0 : i32
    return %1, %c0_i32 : i32, i32
  }
  func.func @transform_2(%arg0: i32, %arg1: i32) -> (i32, i32) {
    %c1_i32 = arith.constant 1 : i32
    %0 = arith.muli %arg0, %c1_i32 : i32
    %1 = arith.addi %0, %arg1 : i32
    %c1_i32_0 = arith.constant 1 : i32
    %2 = arith.muli %arg0, %c1_i32_0 : i32
    %3 = arith.addi %2, %arg1 : i32
    %c0_i32 = arith.constant 0 : i32
    %4 = arith.minsi %3, %c0_i32 : i32
    %c0_i32_1 = arith.constant 0 : i32
    return %1, %4 : i32, i32
  }
  func.func @transform_3(%arg0: i32, %arg1: i32) -> (i32, i32) {
    %c1_i32 = arith.constant 1 : i32
    %0 = arith.muli %arg0, %c1_i32 : i32
    %1 = arith.addi %0, %arg1 : i32
    %c1_i32_0 = arith.constant 1 : i32
    %2 = arith.muli %arg0, %c1_i32_0 : i32
    %3 = arith.addi %2, %arg1 : i32
    %c0_i32 = arith.constant 0 : i32
    %4 = arith.minsi %3, %c0_i32 : i32
    %c0_i32_1 = arith.constant 0 : i32
    return %1, %4 : i32, i32
  }
  func.func @transform_4(%arg0: i32, %arg1: i32) -> (i32, i32) {
    %c1_i32 = arith.constant 1 : i32
    %0 = arith.muli %arg0, %c1_i32 : i32
    %1 = arith.addi %0, %arg1 : i32
    %c0_i32 = arith.constant 0 : i32
    %c0_i32_0 = arith.constant 0 : i32
    return %1, %c0_i32 : i32, i32
  }
  func.func @transform_5(%arg0: i32, %arg1: i32) -> (i32, i32) {
    %c1_i32 = arith.constant 1 : i32
    %0 = arith.muli %arg0, %c1_i32 : i32
    %1 = arith.addi %0, %arg1 : i32
    %c0_i32 = arith.constant 0 : i32
    %c0_i32_0 = arith.constant 0 : i32
    return %1, %c0_i32 : i32, i32
  }
  func.func @transform_6(%arg0: i32, %arg1: i32) -> (i32, i32, i32) {
    %c1_i32 = arith.constant 1 : i32
    %0 = arith.muli %arg0, %c1_i32 : i32
    %1 = arith.addi %0, %arg1 : i32
    %c0_i32 = arith.constant 0 : i32
    %c0_i32_0 = arith.constant 0 : i32
    %c0_i32_1 = arith.constant 0 : i32
    return %1, %c0_i32, %c0_i32_0 : i32, i32, i32
  }
  func.func @transform_7(%arg0: i32, %arg1: i32) -> (i32, i32, i32) {
    %c0_i32 = arith.constant 0 : i32
    %c0_i32_0 = arith.constant 0 : i32
    %c0_i32_1 = arith.constant 0 : i32
    return %arg0, %c0_i32, %c0_i32_0 : i32, i32, i32
  }
  func.func @transform_8(%arg0: i32, %arg1: i32) -> (i32, i32, i32) {
    %c0_i32 = arith.constant 0 : i32
    %c0_i32_0 = arith.constant 0 : i32
    %c0_i32_1 = arith.constant 0 : i32
    return %arg0, %c0_i32, %c0_i32_0 : i32, i32, i32
  }
  func.func @transform_9(%arg0: i32, %arg1: i32) -> (i32, i32, i32) {
    %c0_i32 = arith.constant 0 : i32
    %c0_i32_0 = arith.constant 0 : i32
    %c0_i32_1 = arith.constant 0 : i32
    return %arg0, %c0_i32, %c0_i32_0 : i32, i32, i32
  }
}

</mosaic_0001>

<bundles_post_ra>
// kernel: tpu_custom_call.1
= control target key start
LH: loop header
LB: loop body
LE: loop exit
PB: predicated region body
PF: predicated region fallthrough
CT: control target
= control target key end

     0   :  { %15 = vsyncpa [#allocation3], 0  ;;  %vm937_vm0 = vcmask 261120   ;;  %vm1585_vm1 = vcmask 1043459   ;;  %vm1588_vm2 = vcmask 1044484   ;;  %vm1591_vm3 = vcmask 1045509   ;;  %s5153_s0 = inlined_call_operand.vmem [shape: f32[128,128], index: 0, kind: input, shape index: {}]   ;;  %s5154_s1 = inlined_call_operand.vmem [shape: f32[128,128], index: 1, kind: input, shape index: {}]   ;;  %s5155_s2 = inlined_call_operand.vmem [shape: f32[128,128], index: 2, kind: input, shape index: {}]   ;;  %s5156_s3 = inlined_call_operand.vmem [shape: f32[128,128], index: 3, kind: input, shape index: {}]   ;;  %s5157_s4 = inlined_call_operand.vmem [shape: f32[128,32], index: 4, kind: input, shape index: {}]   ;;  %s5158_s5 = inlined_call_operand.vmem [shape: f32[128,32], index: 5, kind: input, shape index: {}]   ;;  %s5159_s6 = inlined_call_operand.vmem [shape: f32[128,4,32], index: 6, kind: input, shape index: {}]   ;;  %s5160_s7 = inlined_call_operand.hbm [shape: f32[1,1,1], index: 7, kind: output, shape index: {0}]   ;;  %s5161_s8 = inlined_call_operand.hbm [shape: f32[1,1,1], index: 8, kind: output, shape index: {1}]   ;;  %s5162_s9 = inlined_call_operand.hbm [shape: f32[1,1,1], index: 9, kind: output, shape index: {2}]  }
   0x1   :  { %v4833_v0 = vld [vmem:[%s5153_s0] sm:$0xff]  ;;  %v4861_v6 = vld [vmem:[%s5159_s6 + $0x8] sm:$0xf]  ;;  %v4866_v7 = vld [vmem:[%s5159_s6 + $0xc] sm:$0xf]  ;;  %vm1594_vm4 = vcmask 1046534  }
   0x2   :  { %v4838_v1 = vld [vmem:[%s5154_s1] sm:$0xff]  ;;  %317 = vmax.xlane.f32.xlu0 %v4833_v0  ;;  %v4871_v8 = vld [vmem:[%s5159_s6 + $0x10] sm:$0xf]  ;;  %v4876_v9 = vld [vmem:[%s5159_s6 + $0x14] sm:$0xf]  ;;  %v1324_v12 = vmul.f32 %v4861_v6, %v4861_v6  ;;  %v1325_v14 = vmul.f32 %v4866_v7, %v4866_v7  ;;  %vm1597_vm5 = vcmask 1047559  }
   0x3   :  { %v4843_v2 = vld [vmem:[%s5157_s4] sm:$0xff]  ;;  %v1326_v15 = vmul.f32 %v4871_v8, %v4871_v8  ;;  %v1327_v16 = vmul.f32 %v4876_v9, %v4876_v9  ;;  %v4896_v17 = vld [vmem:[%s5159_s6 + $0x18] sm:$0xf]  ;;  %v4901_v18 = vld [vmem:[%s5159_s6 + $0x1c] sm:$0xf]  ;;  %vm3082_vm6 = vcmask 261122  }
   0x4   :  { %v921_v3 = vmul.f32 %v4843_v2, %v4843_v2  ;;  %v4851_v4 = vld [vmem:[%s5159_s6] sm:$0xf]  ;;  %v4856_v5 = vld [vmem:[%s5159_s6 + $0x4] sm:$0xf]  ;;  %v4905_v20 = vrot.slane %v1324_v12, 6  ;;  %v4911_v22 = vrot.slane %v1325_v14, 5  ;;  %v1328_v27 = vmul.f32 %v4896_v17, %v4896_v17 }
   0x5   :  { %v4880_v10 = vmul.f32 %v4851_v4, %v4851_v4  ;;  %v1323_v11 = vmul.f32 %v4856_v5, %v4856_v5  ;;  %v1202_v21 = vld [vmem:[%s5159_s6 + $0x20] sm:$0xf]  ;;  %v4913_v23 = vrot.slane %v1326_v15, 4  ;;  %v1590_v24 = vrot.slane %v1327_v16, 3  ;;  %v1203_v25 = vld [vmem:[%s5159_s6 + $0x24] sm:$0xf] }
   0x6   :  { %v938_v13 = vsel %vm937_vm0, %v921_v3, 0.0  ;;  %610 = vmax.xlane.f32.xlu0 %v4838_v1  ;;  %vm1582_vm7 = vcmask 1042434   ;;  %v1204_v28 = vld [vmem:[%s5159_s6 + $0x28] sm:$0xf]  ;;  %v1205_v29 = vld [vmem:[%s5159_s6 + $0x2c] sm:$0xf]  ;;  %v1329_v34 = vmul.f32 %v4901_v18, %v4901_v18  ;;  %v1330_v39 = vmul.f32 %v1202_v21, %v1202_v21 }
   0x7   :  { %939 = vadd.xlane.f32.xlu1 %v938_v13  ;;  %v4903_v19 = vrot.slane %v1323_v11, 7  ;;  %vm2481_vm8 = vcmask 261121   ;;  %v1206_v32 = vld [vmem:[%s5159_s6 + $0x30] sm:$0xf]  ;;  %v1207_v33 = vld [vmem:[%s5159_s6 + $0x34] sm:$0xf] }
   0x8   :  { %v1593_v36 = vrot.slane %v1328_v27, 2  ;;  %v1208_v38 = vld [vmem:[%s5159_s6 + $0x38] sm:$0xf] }
   0x9   :  { %v2954_v26 = vsel %vm1585_vm1, %v4903_v19, %v4880_v10  ;;  %v2353_v31 = vsel %vm1582_vm7, %v4903_v19, %v4880_v10 }
   0xa   :  { %v2955_v30 = vsel %vm1588_vm2, %v4905_v20, %v2954_v26  ;;  %v2354_v37 = vsel %vm1585_vm1, %v4905_v20, %v2353_v31 }
   0xb   :  { %v2956_v35 = vsel %vm1591_vm3, %v4911_v22, %v2955_v30 }
   0xc   :  { %16 = vsyncpa [#allocation5], 0  ;;  %v2957_v40 = vsel %vm1594_vm4, %v4913_v23, %v2956_v35  ;;  %v2355_v41 = vsel %vm1588_vm2, %v4911_v22, %v2354_v37  ;;  %v1331_v42 = vmul.f32 %v1203_v25, %v1203_v25  ;;  %v1332_v43 = vmul.f32 %v1204_v28, %v1204_v28  ;;  %s4778_s22 = smov [#allocation2]  }
   0xd   :  { %v2958_v44 = vsel %vm1597_vm5, %v1590_v24, %v2957_v40  ;;  %v2356_v45 = vsel %vm1591_vm3, %v4913_v23, %v2355_v41  ;;  %v1333_v46 = vmul.f32 %v1205_v29, %v1205_v29  ;;  %v1334_v47 = vmul.f32 %v1206_v32, %v1206_v32  ;;  %s4583_s23 = sshll.u32 %s4778_s22, 4  ;;  %s5107_s23 = int_to_ptr.vmem [resolvable:$true] %s4583_s23 }
   0xe   :  { %v3083_v48 = vsel %vm3082_vm6, %v2958_v44, 0.0  ;;  %v2357_v49 = vsel %vm1594_vm4, %v1590_v24, %v2356_v45  ;;  %v1335_v50 = vmul.f32 %v1207_v33, %v1207_v33  ;;  %v1336_v51 = vmul.f32 %v1208_v38, %v1208_v38 }
   0xf   :  { %3084 = vadd.xlane.f32.xlu1 %v3083_v48  ;;  %v2358_v52 = vsel %vm1597_vm5, %v1593_v36, %v2357_v49  ;;  %vm1579_vm9 = vcmask 1041409   ;;  %v1596_v53 = vrot.slane %v1329_v34, 1  ;;  %v1599_v54 = vrot.slane %v1331_v42, 7 }
  0x10   :  { %v2482_v55 = vsel %vm2481_vm8, %v2358_v52, 0.0  ;;  %v1601_v56 = vrot.slane %v1332_v43, 6  ;;  %v1603_v57 = vrot.slane %v1333_v46, 5  ;;  %v1605_v58 = vrot.slane %v1334_v47, 4 }
  0x11   :  { %v1607_v59 = vrot.slane %v1335_v50, 3  ;;  %v1609_v60 = vrot.slane %v1336_v51, 2  ;;  %v2359_v61 = vsel %vm1579_vm9, %v1330_v39, %v1596_v53  ;;  %v1580_v62 = vsel %vm1579_vm9, %v4903_v19, %v4880_v10 }
  0x12   :  { %v2360_v63 = vsel %vm1582_vm7, %v1599_v54, %v2359_v61  ;;  %v1583_v3 = vsel %vm1582_vm7, %v4905_v20, %v1580_v62  ;;  %v2959_v11 = vsel %vm1579_vm9, %v1596_v53, %v1593_v36  ;;  %v3559_v12 = vsel %vm1579_vm9, %v1593_v36, %v1590_v24 }
  0x13   :  { %2483 = vadd.xlane.f32.xlu1 %v2482_v55  ;;  %v2361_v13 = vsel %vm1585_vm1, %v1601_v56, %v2360_v63  ;;  %v1586_v14 = vsel %vm1585_vm1, %v4911_v22, %v1583_v3  ;;  %v2960_v15 = vsel %vm1582_vm7, %v1330_v39, %v2959_v11  ;;  %v3560_v16 = vsel %vm1582_vm7, %v1596_v53, %v3559_v12 }
  0x14   :  { %v2362_v21 = vsel %vm1588_vm2, %v1603_v57, %v2361_v13  ;;  %v1589_v25 = vsel %vm1588_vm2, %v4913_v23, %v1586_v14  ;;  %v2961_v26 = vsel %vm1585_vm1, %v1599_v54, %v2960_v15  ;;  %v3561_v27 = vsel %vm1585_vm1, %v1330_v39, %v3560_v16 }
  0x15   :  { %v2363_v28 = vsel %vm1591_vm3, %v1605_v58, %v2362_v21  ;;  %v1592_v29 = vsel %vm1591_vm3, %v1590_v24, %v1589_v25  ;;  %v2962_v30 = vsel %vm1588_vm2, %v1601_v56, %v2961_v26  ;;  %v3562_v31 = vsel %vm1588_vm2, %v1599_v54, %v3561_v27 }
  0x16   :  { %v2364_v32 = vsel %vm1594_vm4, %v1607_v59, %v2363_v28  ;;  %v1595_v33 = vsel %vm1594_vm4, %v1593_v36, %v1592_v29  ;;  %v2963_v34 = vsel %vm1591_vm3, %v1603_v57, %v2962_v30  ;;  %v3563_v35 = vsel %vm1591_vm3, %v1601_v56, %v3562_v31 }
  0x17   :  { %v2365_v37 = vsel %vm1597_vm5, %v1609_v60, %v2364_v32  ;;  %v1598_v38 = vsel %vm1597_vm5, %v1596_v53, %v1595_v33  ;;  %v2964_v39 = vsel %vm1594_vm4, %v1605_v58, %v2963_v34  ;;  %v3564_v24 = vsel %vm1594_vm4, %v1603_v57, %v3563_v35 }
  0x18   :  { %v2485_v40 = vsel %vm937_vm0, %v2365_v37, 0.0  ;;  %v1825_v41 = vsel %vm937_vm0, %v1598_v38, 0.0  ;;  %v2965_v42 = vsel %vm1597_vm5, %v1607_v59, %v2964_v39  ;;  %v3565_v36 = vsel %vm1597_vm5, %v1605_v58, %v3564_v24 }
  0x19   :  { %2486 = vadd.xlane.f32.xlu0 %v2485_v40  ;;  %1826 = vadd.xlane.f32.xlu1 %v1825_v41  ;;  %v3086_v43 = vsel %vm937_vm0, %v2965_v42, 0.0  ;;  %v3687_v44 = vsel %vm937_vm0, %v3565_v36, 0.0  ;;  %v3555_v45 = vsel %vm1588_vm2, %v4903_v19, %v4880_v10  ;;  %vm3683_vm10 = vcmask 261123  }
  0x1a   :  { %v3556_v46 = vsel %vm1591_vm3, %v4905_v20, %v3555_v45  ;;  %v2017_v47 = vrot.slane %v4856_v5, 7  ;;  %v2019_v48 = vrot.slane %v4861_v6, 6  ;;  %v2021_v49 = vrot.slane %v4866_v7, 5 }
  0x1b   :  { %v3557_v50 = vsel %vm1594_vm4, %v4911_v22, %v3556_v46  ;;  %v2023_v51 = vrot.slane %v4871_v8, 4  ;;  %v2025_v52 = vrot.slane %v4876_v9, 3  ;;  %v2027_v53 = vrot.slane %v4896_v17, 2 }
  0x1c   :  { %v3558_v10 = vsel %vm1597_vm5, %v4913_v23, %v3557_v50  ;;  %v2018_v19 = vsel %vm1579_vm9, %v2017_v47, %v4851_v4  ;;  %v2029_v20 = vrot.slane %v4901_v18, 1  ;;  %v2551_v54 = vrot.slane %v4851_v4, 1 }
  0x1d   :  { %3087 = vadd.xlane.f32.xlu0 %v3086_v43  ;;  %3688 = vadd.xlane.f32.xlu1 %v3687_v44  ;;  %v3684_v55 = vsel %vm3683_vm10, %v3558_v10, 0.0  ;;  %v2020_v22 = vsel %vm1582_vm7, %v2019_v48, %v2018_v19  ;;  %v2553_v56 = vrot.slane %v4861_v6, 7  ;;  %v2555_v57 = vrot.slane %v4866_v7, 6 }
  0x1e   :  { %v2022_v58 = vsel %vm1585_vm1, %v2021_v49, %v2020_v22  ;;  %v2552_v23 = vsel %vm1579_vm9, %v4856_v5, %v2551_v54  ;;  %v2557_v59 = vrot.slane %v4871_v8, 5  ;;  %v2559_v60 = vrot.slane %v4876_v9, 4 }
  0x1f   :  { %v2024_v61 = vsel %vm1588_vm2, %v2023_v51, %v2022_v58  ;;  %v2554_v62 = vsel %vm1582_vm7, %v2553_v56, %v2552_v23  ;;  %v2561_v63 = vrot.slane %v4896_v17, 3  ;;  %v2563_v3 = vrot.slane %v4901_v18, 2 }
  0x20   :  { %v2026_v11 = vsel %vm1591_vm3, %v2025_v52, %v2024_v61  ;;  %v2556_v12 = vsel %vm1585_vm1, %v2555_v57, %v2554_v62  ;;  %v3152_v13 = vrot.slane %v4851_v4, 2  ;;  %v3153_v14 = vrot.slane %v4856_v5, 1 }
  0x21   :  { %3685 = vadd.xlane.f32.xlu0 %v3684_v55  ;;  %v2028_v15 = vsel %vm1594_vm4, %v2027_v53, %v2026_v11  ;;  %v2558_v16 = vsel %vm1588_vm2, %v2557_v59, %v2556_v12  ;;  %v3156_v21 = vrot.slane %v4866_v7, 7  ;;  %v3158_v25 = vrot.slane %v4871_v8, 6 }
  0x22   :  { %v2030_v26 = vsel %vm1597_vm5, %v2029_v20, %v2028_v15  ;;  %v2560_v27 = vsel %vm1591_vm3, %v2559_v60, %v2558_v16  ;;  %v3154_v28 = vsel %vm1579_vm9, %v3153_v14, %v3152_v13  ;;  %v3160_v29 = vrot.slane %v4876_v9, 5 }
  0x23   :  { %v2257_v30 = vmul.f32 %v2030_v26, %v4843_v2  ;;  %v2562_v31 = vsel %vm1594_vm4, %v2561_v63, %v2560_v27  ;;  %v3155_v32 = vsel %vm1582_vm7, %v4861_v6, %v3154_v28  ;;  %v3162_v33 = vrot.slane %v4896_v17, 4 }
  0x24   :  { %v2564_v34 = vsel %vm1597_vm5, %v2563_v3, %v2562_v31  ;;  %v3157_v35 = vsel %vm1585_vm1, %v3156_v21, %v3155_v32  ;;  %v3164_v37 = vrot.slane %v4901_v18, 3  ;;  %v3753_v38 = vrot.slane %v4851_v4, 3 }
  0x25   :  { %v2273_v39 = vsel %vm937_vm0, %v2257_v30, 0.0  ;;  %v2791_v24 = vmul.f32 %v2564_v34, %v4843_v2  ;;  %v3159_v40 = vsel %vm1588_vm2, %v3158_v25, %v3157_v35  ;;  %v3754_v41 = vrot.slane %v4856_v5, 2 }
  0x26   :  { %2274 = vadd.xlane.f32.xlu0 %v2273_v39  ;;  %v3161_v42 = vsel %vm1591_vm3, %v3160_v29, %v3159_v40  ;;  %v3756_v36 = vrot.slane %v4861_v6, 1  ;;  %v3759_v43 = vrot.slane %v4871_v8, 7  ;;  %v3761_v46 = vrot.slane %v4876_v9, 6  ;;  %v905_v6 = vld [vmem:[%s5158_s5] sm:$0xff] }
  0x27   :  { %v2807_v44 = vsel %vm937_vm0, %v2791_v24, 0.0  ;;  %v3163_v45 = vsel %vm1594_vm4, %v3162_v33, %v3161_v42  ;;  %v3755_v4 = vsel %vm1579_vm9, %v3754_v41, %v3753_v38  ;;  %v3763_v48 = vrot.slane %v4896_v17, 5 }
  0x28   :  { %2808 = vadd.xlane.f32.xlu1 %v2807_v44  ;;  %v3165_v47 = vsel %vm1597_vm5, %v3164_v37, %v3163_v45  ;;  %v3757_v5 = vsel %vm1582_vm7, %v3756_v36, %v3755_v4  ;;  %v3765_v50 = vrot.slane %v4901_v18, 4  ;;  %v1098_v9 = vmul.f32 %v905_v6, %v4843_v2 }
  0x29   :  { %v3392_v8 = vmul.f32 %v3165_v47, %v4843_v2  ;;  %v3758_v49 = vsel %vm1585_vm1, %v4866_v7, %v3757_v5  ;;  %v233_v58 = vlaneseq  ;;  %v1018_v23 = vmul.f32 %v905_v6, %v905_v6 }
  0x2a   :  { %v3760_v51 = vsel %vm1588_vm2, %v3759_v43, %v3758_v49  ;;  %v1114_v17 = vsel %vm937_vm0, %v1098_v9, 0.0  ;;  %vm227_vm12 = vcmask 0   ;;  %v4776_v11 = vmov 0.0  }
  0x2b   :  { %v3408_v52 = vsel %vm937_vm0, %v3392_v8, 0.0  ;;  %v3762_v53 = vsel %vm1591_vm3, %v3761_v46, %v3760_v51  ;;  %v284_v59 = vand.u32 127, %v233_v58  ;;  %v1034_v61 = vsel %vm937_vm0, %v1018_v23, 0.0  ;;  %229 = vst.msk [vmem:[#allocation4] sm:$0x1] %vm227_vm12, %v4776_v11 }
  0x2c   :  { %3409 = vadd.xlane.f32.xlu0 %v3408_v52  ;;  %v3764_v10 = vsel %vm1594_vm4, %v3763_v48, %v3762_v53  ;;  %228 = vst.msk [vmem:[#allocation2] sm:$0x1] %vm227_vm12, %v4776_v11  ;;  %230 = vst.msk [vmem:[#allocation6] sm:$0x1] %vm227_vm12, %v4776_v11  ;;  %vm2888_vm13 = vcmask 1046528   ;;  %vm3489_vm14 = vcmask 1045504  }
  0x2d   :  { %v3766_v19 = vsel %vm1597_vm5, %v3765_v50, %v3764_v10  ;;  %vm4090_vm15 = vcmask 1044480  }
  0x2e   :  { %v3993_v20 = vmul.f32 %v3766_v19, %v4843_v2  ;;  %v234_v2 = vshrl.u32 %v233_v58, 7 }
  0x30   :  { %v4009_v7 = vsel %vm937_vm0, %v3993_v20, 0.0  ;;  %vm285_vm11 = vcmp.eq.s32.totalorder %v234_v2, %v284_v59  ;;  %vm4524_vm0 = vcmask 7168  }
  0x31   :  { %4010 = vadd.xlane.f32.xlu1 %v4009_v7 }
  0x8f   :  { %v5079_v18 = vpop.xlane.xlu0 %317 }
  0x90   :  { %v349_v54 = vsub.f32 %v4833_v0, %v5079_v18  ;;  %v477_v0 = vld [vmem:[%s5155_s2] sm:$0xff]  ;;  %s4777_s2 = smov [#allocation4]  }
  0x91   :  { %v493_v63 = vsel %vm285_vm11, %v477_v0, 0.0 }
  0x92   :  { %v365_v55 = vmul.f32 1.442695, %v349_v54 }
  0x93   :  { %v5083_v22 = vpop.xlane.xlu0 %610 }
  0x94   :  { %4670 = vpow2.f32 %v365_v55  ;;  %v642_v56 = vsub.f32 %v4838_v1, %v5083_v22  ;;  %v770_v1 = vld [vmem:[%s5156_s3] sm:$0xff]  ;;  %v940_v12 = vpop.xlane.xlu1 %939  ;;  %s4593_s3 = sshll.u32 %s4777_s2, 4  ;;  %s4594_s3 = int_to_ptr.vmem [resolvable:$true] %s4593_s3 }
  0x95   :  { %v786_v3 = vsel %vm285_vm11, %v770_v1, 0.0  ;;  %s4706_s24 = scalar_lea.vmem %s4594_s3, 16  ;;  %s4710_s25 = scalar_lea.vmem %s4594_s3, 32 }
  0x96   :  { %v658_v57 = vmul.f32 1.442695, %v642_v56  ;;  %p4707_p0 = scmp.ne.s32.totalorder %s4594_s3, %s4706_s24  ;;  %p4711_p1 = scmp.lt.s32.totalorder %s4594_s3, %s4594_s3 }
  0x97   :  { %p4712_p2 = scmp.lt.s32.totalorder %s4710_s25, %s4706_s24 }
  0x98   :  { %4672 = vpow2.f32 %v658_v57 }
  0x99   :  { %4674 = vrsqrt.f32 %v940_v12  ;;  %p4713_p3 = por %p4712_p2, %p4711_p1 }
  0x9b   :  { %p4714_p4 = pnand %p4713_p3, %p4707_p0 }
  0x9c   :  { %v3085_v13 = vpop.xlane.xlu1 %3084 }
  0x9e   :  { %v4671_v60 = vpop.eup %4670 }
  0x9f   :  { %397 = vadd.xlane.f32.xlu0 %v4671_v60 }
  0xa0   :  { %v2484_v14 = vpop.xlane.xlu1 %2483 }
  0xa1   :  { %4676 = vrsqrt.f32 %v2484_v14 }
  0xa2   :  { %v4673_v62 = vpop.eup %4672 }
  0xa3   :  { %1035 = vadd.xlane.f32.xlu0 %v1034_v61  ;;  %690 = vadd.xlane.f32.xlu1 %v4673_v62  ;;  %v4675_v27 = vpop.eup %4674 }
  0xa4   :  { %v5097_v31 = vmul.f32 14.285714, %v4675_v27 }
  0xa6   :  { %v2487_v15 = vpop.xlane.xlu0 %2486  ;;  %v1827_v16 = vpop.xlane.xlu1 %1826 }
  0xa7   :  { %1115 = vadd.xlane.f32.xlu1 %v1114_v17  ;;  %509 = vadd.xlane.f32.xlu0 %v493_v63  ;;  %4678 = vrsqrt.f32 %v2487_v15 }
  0xa8   :  { %4680 = vrsqrt.f32 %v3085_v13 }
  0xaa   :  { %v3088_v21 = vpop.xlane.xlu0 %3087  ;;  %v3689_v25 = vpop.xlane.xlu1 %3688 }
  0xab   :  { %802 = vadd.xlane.f32.xlu1 %v786_v3  ;;  %4682 = vrsqrt.f32 %v3088_v21  ;;  %v4677_v28 = vpop.eup %4676 }
  0xac   :  { %4684 = vrsqrt.f32 %v1827_v16  ;;  %v2889_v33 = vrot.slane %v4677_v28, 1 }
  0xad   :  { %4686 = vrsqrt.f32 %v3689_v25 }
  0xae   :  { %v3686_v26 = vpop.xlane.xlu0 %3685 }
  0xaf   :  { %4688 = vrsqrt.f32 %v3686_v26 }
  0xb1   :  { %v4679_v29 = vpop.eup %4678 }
  0xb2   :  { %v4681_v32 = vpop.eup %4680  ;;  %v2890_v34 = vrot.slane %v4679_v29, 1 }
  0xb3   :  { %v2275_v30 = vpop.xlane.xlu0 %2274  ;;  %v3490_v41 = vrot.slane %v4681_v32, 2 }
  0xb4   :  { %v2321_v39 = vmul.f32 %v2275_v30, %v5097_v31  ;;  %v2891_v36 = vsel %vm2888_vm13, %v2889_v33, %v2890_v34 }
  0xb5   :  { %v2809_v35 = vpop.xlane.xlu1 %2808  ;;  %v4683_v37 = vpop.eup %4682 }
  0xb6   :  { %v4685_v38 = vpop.eup %4684  ;;  %v2855_v24 = vmul.f32 %v2809_v35, %v5097_v31  ;;  %v3491_v42 = vrot.slane %v4683_v37, 2 }
  0xb7   :  { %v4687_v40 = vpop.eup %4686  ;;  %v2337_v45 = vmul.f32 %v4685_v38, %v2321_v39 }
  0xb8   :  { %v2938_v4 = vmul.f32 %v2891_v36, %v2855_v24  ;;  %v4092_v47 = vrot.slane %v4687_v40, 3  ;;  %v3492_v48 = vsel %vm3489_vm14, %v3490_v41, %v3491_v42 }
  0xb9   :  { %v3410_v43 = vpop.xlane.xlu0 %3409  ;;  %v4689_v44 = vpop.eup %4688 }
  0xba   :  { %v3456_v46 = vmul.f32 %v3410_v43, %v5097_v31  ;;  %v4091_v5 = vrot.slane %v4689_v44, 3  ;;  %v4156_v8 = vmax.f32 %v2337_v45, %v2938_v4 }
  0xbc   :  { %v3539_v49 = vmul.f32 %v3492_v48, %v3456_v46  ;;  %v4093_v9 = vsel %vm4090_vm15, %v4091_v5, %v4092_v47  ;;  %v4567_v48 = vld [vmem:[#allocation4] sm:$0x1] }
  0xbe   :  { %v4011_v6 = vpop.xlane.xlu1 %4010  ;;  %v4172_v51 = vmax.f32 %v4156_v8, %v3539_v49 }
  0xbf   :  { %v4057_v50 = vmul.f32 %v4011_v6, %v5097_v31 }
  0xc1   :  { %v4140_v52 = vmul.f32 %v4093_v9, %v4057_v50 }
  0xc3   :  { %v4188_v53 = vmax.f32 %v4172_v51, %v4140_v52 }
  0xc5   :  { %v4204_v17 = vsub.f32 %v2337_v45, %v4188_v53  ;;  %v4252_v10 = vsub.f32 %v2938_v4, %v4188_v53  ;;  %v4316_v7 = vsub.f32 %v3539_v49, %v4188_v53  ;;  %v4380_v55 = vsub.f32 %v4140_v52, %v4188_v53  ;;  %v4563_v49 = vld [vmem:[#allocation2] sm:$0x1] }
  0xc7   :  { %v4220_v19 = vmul.f32 1.442695, %v4204_v17  ;;  %v4268_v20 = vmul.f32 1.442695, %v4252_v10  ;;  %v4332_v54 = vmul.f32 1.442695, %v4316_v7 }
  0xc8   :  { %v4396_v56 = vmul.f32 1.442695, %v4380_v55 }
  0xc9   :  { %4690 = vpow2.f32 %v4220_v19 }
  0xca   :  { %4692 = vpow2.f32 %v4268_v20 }
  0xcb   :  { %4694 = vpow2.f32 %v4332_v54 }
  0xcc   :  { %4696 = vpow2.f32 %v4396_v56 }
  0xd3   :  { %v4691_v57 = vpop.eup %4690 }
  0xd4   :  { %v4693_v58 = vpop.eup %4692 }
  0xd5   :  { %v4300_v23 = vadd.f32 %v4693_v58, %v4691_v57  ;;  %v4695_v2 = vpop.eup %4694 }
  0xd6   :  { %v4697_v60 = vpop.eup %4696 }
  0xd7   :  { %v4364_v59 = vadd.f32 %v4695_v2, %v4300_v23 }
  0xd9   :  { %v4428_v61 = vadd.f32 %v4697_v60, %v4364_v59 }
  0xdb   :  { %4698 = vlog2.f32 %v4428_v61 }
  0xe5   :  { %v4699_v1 = vpop.eup %4698 }
  0xe6   :  { %v4445_v13 = vmul.f32 0.6931472, %v4699_v1 }
  0xe8   :  { %v4476_v29 = vadd.f32 %v4445_v13, %v4188_v53 }
 0x12c   :  { %v398_v0 = vpop.xlane.xlu0 %397 }
 0x12d   :  { %4700 = vlog2.f32 %v398_v0 }
 0x130   :  { %v691_v62 = vpop.xlane.xlu1 %690  ;;  %v1036_v63 = vpop.xlane.xlu0 %1035 }
 0x131   :  { %4702 = vlog2.f32 %v691_v62 }
 0x132   :  { %4704 = vrsqrt.f32 %v1036_v63 }
 0x134   :  { %v1116_v12 = vpop.xlane.xlu1 %1115  ;;  %v510_v14 = vpop.xlane.xlu0 %509 }
 0x135   :  { %v1162_v21 = vmul.f32 %v1116_v12, %v5097_v31 }
 0x137   :  { %v4701_v3 = vpop.eup %4700 }
 0x138   :  { %v430_v11 = vmul.f32 0.6931472, %v4701_v3  ;;  %v803_v30 = vpop.xlane.xlu1 %802 }
 0x13a   :  { %v461_v15 = vadd.f32 %v430_v11, %v5079_v18 }
 0x13b   :  { %v4703_v16 = vpop.eup %4702 }
 0x13c   :  { %v4705_v25 = vpop.eup %4704  ;;  %v723_v26 = vmul.f32 0.6931472, %v4703_v16  ;;  %v541_v27 = vsub.f32 %v461_v15, %v510_v14 }
 0x13d   :  { %v1178_v28 = vmul.f32 %v4705_v25, %v1162_v21 }
 0x13e   :  { %v588_v32 = vrot.slane %v541_v27, 4  ;;  %v754_v33 = vadd.f32 %v723_v26, %v5083_v22 }
 0x13f   :  { %v4492_v34 = vsub.f32 %v4476_v29, %v1178_v28 }
 0x140   :  { %v589_v35 = vadd.f32 %v588_v32, %v541_v27  ;;  %v834_v37 = vsub.f32 %v754_v33, %v803_v30 }
 0x141   :  { %v4525_v38 = vsel %vm4524_vm0, %v4492_v34, 0.0 }
 0x142   :  { %v4556_v39 = vrot.slane %v4525_v38, 4  ;;  %v590_v24 = vrot.slane %v589_v35, 2  ;;  %v881_v18 = vrot.slane %v834_v37, 4 }
 0x144   :  { %v4557_v40 = vadd.f32 %v4556_v39, %v4525_v38  ;;  %v591_v41 = vadd.f32 %v590_v24, %v589_v35  ;;  %v882_v31 = vadd.f32 %v881_v18, %v834_v37 }
 0x146   :  { %v4558_v42 = vrot.slane %v4557_v40, 2  ;;  %v883_v36 = vrot.slane %v882_v31, 2  ;;  %v592_v44 = vrot.slane %v591_v41, 1 }
 0x148   :  { %v4559_v43 = vadd.f32 %v4558_v42, %v4557_v40  ;;  %v884_v45 = vadd.f32 %v883_v36, %v882_v31  ;;  %v593_v47 = vadd.f32 %v592_v44, %v591_v41 }
 0x14a   :  { %v885_v4 = vrot.slane %v884_v45, 1  ;;  %v4560_v46 = vrot.slane %v4559_v43, 1 }
 0x14c   :  { %v886_v5 = vadd.f32 %v885_v4, %v884_v45  ;;  %v4561_v22 = vadd.f32 %v4560_v46, %v4559_v43 }
 0x14e   :  { %v4562_v6 = vmul.f32 0.125, %v4561_v22  ;;  %v887_v8 = vadd.f32 %v886_v5, %v593_v47 }
 0x150   :  { %v4568_v50 = vadd.f32 %v4567_v48, %v4562_v6  ;;  %v888_v9 = vmul.f32 0.0625, %v887_v8 }
 0x152   :  { %4569 = vst.msk [vmem:[#allocation4] sm:$0x1] %vm227_vm12, %v4568_v50  ;;  %v4564_v51 = vadd.f32 %v4563_v49, %v888_v9 }
 0x153   :  { %4717 = shalt.err (!%p4714_p4)
}
 0x154   :  { %s4718_s28 = scalar_lea.hbm %s5161_s8, 16 }
 0x155   :  { %p4719_p5 = scmp.ne.s32.totalorder %s5161_s8, %s4718_s28  ;;  %p4722_p6 = scmp.lt.u32.totalorder %s4718_s28, %s5161_s8 }
 0x157   :  { %p4724_p7 = pnand %p4722_p6, %p4719_p5 }
 0x159   :  { %4727 = shalt.err (!%p4724_p7)
}
 0x15a   :  { %4596 = dma.vmem_to_hbm [thread:$0]  %s4594_s3, 16, %s5161_s8, [#allocation5]   ;;  %4566 = vst.msk [vmem:[#allocation2] sm:$0x1] %vm227_vm12, %v4564_v51 }
 0x15b   :  { %s4728_s14 = scalar_lea.vmem %s5107_s23, 16  ;;  %s4732_s0 = scalar_lea.vmem %s5107_s23, 32 }
 0x15c   :  { %p4729_p8 = scmp.ne.s32.totalorder %s5107_s23, %s4728_s14  ;;  %p4733_p9 = scmp.lt.s32.totalorder %s5107_s23, %s5107_s23 }
 0x15d   :  { %p4734_p10 = scmp.lt.s32.totalorder %s4732_s0, %s4728_s14 }
 0x15f   :  { %p4735_p11 = por %p4734_p10, %p4733_p9 }
 0x161   :  { %p4736_p12 = pnand %p4735_p11, %p4729_p8 }
 0x163   :  { %4739 = shalt.err (!%p4736_p12)
}
 0x164   :  { %s4740_s16 = scalar_lea.hbm %s5160_s7, 16 }
 0x165   :  { %p4741_p13 = scmp.ne.s32.totalorder %s5160_s7, %s4740_s16  ;;  %p4744_p0 = scmp.lt.u32.totalorder %s4740_s16, %s5160_s7 }
 0x167   :  { %p4746_p1 = pnand %p4744_p0, %p4741_p13 }
 0x169   :  { %4749 = shalt.err (!%p4746_p1)
}
 0x16a   :  { %4586 = dma.vmem_to_hbm [thread:$0]  %s5107_s23, 16, %s5160_s7, [#allocation3]   ;;  %v4573_v52 = vld [vmem:[#allocation2] sm:$0x1]  ;;  %v4574_v53 = vld [vmem:[#allocation4] sm:$0x1] }
 0x16b   :  { %s4779_s19 = smov [#allocation6]   ;;  %v4575_v17 = vadd.f32 %v4574_v53, %v4573_v52 }
 0x16c   :  { %s4603_s20 = sshll.u32 %s4779_s19, 4  ;;  %s4604_s20 = int_to_ptr.vmem [resolvable:$true] %s4603_s20 }
 0x16d   :  { %4576 = vst.msk [vmem:[#allocation6] sm:$0x1] %vm227_vm12, %v4575_v17  ;;  %s4750_s21 = scalar_lea.vmem %s4604_s20, 16  ;;  %s4754_s2 = scalar_lea.vmem %s4604_s20, 32 }
 0x16e   :  { %p4751_p2 = scmp.ne.s32.totalorder %s4604_s20, %s4750_s21  ;;  %p4755_p3 = scmp.lt.s32.totalorder %s4604_s20, %s4604_s20 }
 0x16f   :  { %p4756_p4 = scmp.lt.s32.totalorder %s4754_s2, %s4750_s21 }
 0x171   :  { %p4757_p5 = por %p4756_p4, %p4755_p3 }
 0x173   :  { %p4758_p6 = pnand %p4757_p5, %p4751_p2 }
 0x175   :  { %4761 = shalt.err (!%p4758_p6)
}
 0x176   :  { %s4762_s7 = scalar_lea.hbm %s5162_s9, 16 }
 0x177   :  { %p4763_p7 = scmp.ne.s32.totalorder %s5162_s9, %s4762_s7  ;;  %p4766_p8 = scmp.lt.u32.totalorder %s4762_s7, %s5162_s9 }
 0x179   :  { %p4768_p9 = pnand %p4766_p8, %p4763_p7 }
 0x17b   :  { %4771 = shalt.err (!%p4768_p9)
}
 0x17c   :  { %4606 = dma.vmem_to_hbm [thread:$0]  %s4604_s20, 16, %s5162_s9, [#allocation5]  }
 0x17d   :  { %4772 = dma.done.wait [#allocation3], 16  }
 0x17e   :  { %4773 = vsyncadd [#allocation3], 4294967280 }
 0x17f   :  { %4774 = dma.done.wait [#allocation5], 32  }
 0x180   :  { %4775 = vsyncadd [#allocation5], 4294967264 }
 0x181   :  { %4616 = vsyncpa [#allocation3], 1 }
 0x182   :  { %4617 = vsyncpa [#allocation5], 1 }

</bundles_post_ra>
